<compile_context>
chip_gen: v5e
topology: v5e:2x2
jax: 0.10.0
libtpu: 0.0.40
codegen_flags: <defaults>
</compile_context>

<pallas_src>
import jax
import jax.numpy as jnp
from jax import lax
from jax.experimental import pallas as pl
from jax.experimental.pallas import tpu as pltpu


def _linear_kernel(x_ref, w_ref, b_ref, o_ref):
    # x_ref: (B, F), w_ref: (TO, F) in PyTorch layout, b_ref: (1, TO).
    # Contract along F directly (no transpose needed; the MXU handles it).
    acc = lax.dot_general(
        x_ref[...], w_ref[...],
        dimension_numbers=(((1,), (1,)), ((), ())),
        preferred_element_type=jnp.float32,
    )
    o_ref[...] = (acc + b_ref[...]).astype(o_ref.dtype)


def _round_up(x, m):
    return ((x + m - 1) // m) * m


def _pick_output_tile(o_pad, f, dtype_bytes=4, vmem_budget_bytes=16 * 1024 * 1024):
    """Largest tile in {512, 256, 128} dividing o_pad whose double-buffered
    weight footprint (2 * TO * F * dtype_bytes) stays within budget."""
    for to in (512, 256, 128):
        if o_pad % to == 0 and 2 * to * f * dtype_bytes <= vmem_budget_bytes:
            return to
    return 128


def finetune_resnet152_forward(x, weight, bias):
    """Pallas equivalent of FineTuneResNet152.forward (nn.Linear).

    Args:
      x:      (B, feature_size) float32
      weight: (output_size, feature_size) float32  -- PyTorch nn.Linear layout
      bias:   (output_size,) float32
    Returns:
      (B, output_size) float32
    """
    B, F = x.shape
    O = weight.shape[0]

    # Lane-dense output: pad O up to a multiple of 128, then pick a tile TO
    # (multiple of 128) that divides the padded extent.
    O_pad = _round_up(O, 128)
    TO = _pick_output_tile(O_pad, F)
    O_pad = _round_up(O_pad, TO)  # guarantee O_pad % TO == 0

    if O_pad != O:
        weight = jnp.pad(weight, ((0, O_pad - O), (0, 0)))
        bias = jnp.pad(bias, (0, O_pad - O))
    b2d = bias.reshape(1, O_pad)

    grid = (O_pad // TO,)

    out = pl.pallas_call(
        _linear_kernel,
        out_shape=jax.ShapeDtypeStruct((B, O_pad), x.dtype),
        grid=grid,
        in_specs=[
            # x stays resident across O tiles (constant block index).
            pl.BlockSpec((B, F), lambda j: (0, 0)),
            # Weight streamed tile-by-tile over the output dim (PyTorch layout).
            pl.BlockSpec((TO, F), lambda j: (j, 0)),
            # Bias tile matching the output tile.
            pl.BlockSpec((1, TO), lambda j: (0, j)),
        ],
        out_specs=pl.BlockSpec((B, TO), lambda j: (0, j)),
        compiler_params=pltpu.CompilerParams(
            # Independent output tiles -> parallel (sharded across TCs on v7x,
            # neutral on v5e/v6e).
            dimension_semantics=("parallel",),
        ),
        cost_estimate=pl.CostEstimate(
            flops=2 * B * F * O_pad,
            transcendentals=0,
            bytes_accessed=4 * (B * F + O_pad * F + B * O_pad + O_pad),
        ),
    )(x, weight, b2d)

    return out[:, :O] if O_pad != O else out


def init_linear_params(key, feature_size, output_size):
    """Deterministic init mirroring nn.Linear's default U(-1/sqrt(in), 1/sqrt(in))."""
    kw, kb = jax.random.split(key)
    bound = 1.0 / (feature_size ** 0.5)
    weight = jax.random.uniform(
        kw, (output_size, feature_size), jnp.float32, -bound, bound)
    bias = jax.random.uniform(
        kb, (output_size,), jnp.float32, -bound, bound)
    return weight, bias


if __name__ == "__main__":
    key = jax.random.PRNGKey(0)
    k_x, k_p, k_x2, k_p2 = jax.random.split(key, 4)

    # Case 1: small synthetic shapes (exercises O-padding / lane-dense path).
    batch = 4
    feature_size = 32
    output_size = 16

    x = jax.random.normal(k_x, (batch, feature_size), jnp.float32)
    weight, bias = init_linear_params(k_p, feature_size, output_size)

    out = finetune_resnet152_forward(x, weight, bias)
    out = jax.block_until_ready(out)

    ref = x @ weight.T + bias
    assert out.shape == (batch, output_size)
    assert jnp.allclose(out, ref, atol=1e-5, rtol=1e-5), "mismatch vs reference (case 1)"

    # Case 2: lane-dense multi-tile grid (exercises the tiled/pipelined path).
    feature_size2 = 256
    output_size2 = 384  # -> 3 output tiles of 128
    x2 = jax.random.normal(k_x2, (batch, feature_size2), jnp.float32)
    weight2, bias2 = init_linear_params(k_p2, feature_size2, output_size2)

    out2 = finetune_resnet152_forward(x2, weight2, bias2)
    out2 = jax.block_until_ready(out2)

    ref2 = x2 @ weight2.T + bias2
    assert out2.shape == (batch, output_size2)
    assert jnp.allclose(out2, ref2, atol=1e-4, rtol=1e-5), "mismatch vs reference (case 2)"

    print("KERNEL_OK")
</pallas_src>

<mosaic_0001>
module attributes {stable_mosaic.version = 11 : i64} {
  func.func @_linear_kernel(%arg0: i32, %arg1: memref<4x32xf32, #tpu.memory_space<vmem>>, %arg2: memref<128x32xf32, #tpu.memory_space<vmem>>, %arg3: memref<1x128xf32, #tpu.memory_space<vmem>>, %arg4: memref<4x128xf32, #tpu.memory_space<vmem>>) attributes {dimension_semantics = [#tpu.dimension_semantics<parallel>], iteration_bounds = array<i64: 1>, scalar_prefetch = 0 : i64, scratch_operands = 0 : i64, tpu.core_type = #tpu.core_type<tc>, window_params = [{pipeline_mode = #tpu.pipeline_mode<synchronous>, transform_indices = @transform_0, window_bounds = array<i64: 4, 32>}, {transform_indices = @transform_1, window_bounds = array<i64: 128, 32>}, {transform_indices = @transform_2, window_bounds = array<i64: 1, 128>}, {transform_indices = @transform_3, window_bounds = array<i64: 4, 128>}]} {
    %c0 = arith.constant 0 : index
    %c0_0 = arith.constant 0 : index
    %0 = vector.load %arg1[%c0, %c0_0] : memref<4x32xf32, #tpu.memory_space<vmem>>, vector<4x32xf32>
    %c0_1 = arith.constant 0 : index
    %c0_2 = arith.constant 0 : index
    %1 = vector.load %arg2[%c0_1, %c0_2] : memref<128x32xf32, #tpu.memory_space<vmem>>, vector<128x32xf32>
    %cst = arith.constant dense<0.000000e+00> : vector<4x128xf32>
    %2 = tpu.matmul %0, %1, %cst {dimension_numbers = #tpu.dot_dimension_numbers<[1], [1], [0], [0], [0, 0, 1, 0], [], []>} : vector<4x32xf32>, vector<128x32xf32>, vector<4x128xf32> -> vector<4x128xf32>
    %c0_3 = arith.constant 0 : index
    %c0_4 = arith.constant 0 : index
    %3 = vector.load %arg3[%c0_3, %c0_4] : memref<1x128xf32, #tpu.memory_space<vmem>>, vector<1x128xf32>
    %4 = vector.broadcast %3 : vector<1x128xf32> to vector<4x128xf32>
    %5 = arith.addf %2, %4 : vector<4x128xf32>
    %c0_5 = arith.constant 0 : index
    %c0_6 = arith.constant 0 : index
    %6 = vector.load %arg4[%c0_5, %c0_6] : memref<4x128xf32, #tpu.memory_space<vmem>>, vector<4x128xf32>
    tpu.vector_store %arg4[%c0_5, %c0_6], %5 {strides = array<i32>} : memref<4x128xf32, #tpu.memory_space<vmem>>, vector<4x128xf32>,
    return
  }
  func.func @transform_0(%arg0: i32) -> (i32, i32) {
    %c0_i32 = arith.constant 0 : i32
    %c0_i32_0 = arith.constant 0 : i32
    %c0_i32_1 = arith.constant 0 : i32
    return %c0_i32, %c0_i32_0 : i32, i32
  }
  func.func @transform_1(%arg0: i32) -> (i32, i32) {
    %c0_i32 = arith.constant 0 : i32
    %c0_i32_0 = arith.constant 0 : i32
    return %arg0, %c0_i32 : i32, i32
  }
  func.func @transform_2(%arg0: i32) -> (i32, i32) {
    %c0_i32 = arith.constant 0 : i32
    %c0_i32_0 = arith.constant 0 : i32
    return %c0_i32, %arg0 : i32, i32
  }
  func.func @transform_3(%arg0: i32) -> (i32, i32) {
    %c0_i32 = arith.constant 0 : i32
    %c0_i32_0 = arith.constant 0 : i32
    return %c0_i32, %arg0 : i32, i32
  }
}

</mosaic_0001>

<bundles_post_ra>
// kernel: tpu_custom_call.1
= control target key start
LH: loop header
LB: loop body
LE: loop exit
PB: predicated region body
PF: predicated region fallthrough
CT: control target
= control target key end

     0   :  { %vm36_vm0 = vcmask 261120   ;;  %s265_s0 = inlined_call_operand.vmem [shape: f32[4,32], index: 0, kind: input, shape index: {}]   ;;  %s266_s1 = inlined_call_operand.vmem [shape: f32[128,32], index: 1, kind: input, shape index: {}]   ;;  %s267_s2 = inlined_call_operand.vmem [shape: f32[1,128], index: 2, kind: input, shape index: {}]   ;;  %s268_s3 = inlined_call_operand.hbm [shape: f32[4,128], index: 3, kind: output, shape index: {}]  }
   0x1   :  { %v31_v0 = vld [vmem:[%s266_s1 + $0x78] sm:$0xff]  ;;  %v30_v1 = vld [vmem:[%s266_s1 + $0x70] sm:$0xff] }
   0x2   :  { %125 = vmatpush.xpose.msk.msra.mxu0 %vm36_vm0, %v31_v0 }
   0x3   :  { %8 = vsyncpa [#allocation3], 0  ;;  %v29_v2 = vld [vmem:[%s266_s1 + $0x68] sm:$0xff]  ;;  %v28_v3 = vld [vmem:[%s266_s1 + $0x60] sm:$0xff]  ;;  %s170_s21 = smov [#allocation2]   ;;  %s116_s25 = sshll.u32 %s268_s3, 4  ;;  %s117_s25 = int_to_ptr.hbm [resolvable:$true] %s116_s25 }
   0x4   :  { %v27_v4 = vld [vmem:[%s266_s1 + $0x58] sm:$0xff]  ;;  %v26_v5 = vld [vmem:[%s266_s1 + $0x50] sm:$0xff]  ;;  %v25_v6 = vld [vmem:[%s266_s1 + $0x48] sm:$0xff]  ;;  %s114_s22 = sshll.u32 %s170_s21, 4  ;;  %s115_s22 = int_to_ptr.vmem [resolvable:$true] %s114_s22 }
   0x5   :  { %v24_v7 = vld [vmem:[%s266_s1 + $0x40] sm:$0xff]  ;;  %v23_v8 = vld [vmem:[%s266_s1 + $0x38] sm:$0xff]  ;;  %v22_v9 = vld [vmem:[%s266_s1 + $0x30] sm:$0xff] }
   0x6   :  { %126 = vmatpush.xpose.msk.msra.mxu0 %vm36_vm0, %v30_v1  ;;  %v21_v10 = vld [vmem:[%s266_s1 + $0x28] sm:$0xff]  ;;  %v20_v11 = vld [vmem:[%s266_s1 + $0x20] sm:$0xff]  ;;  %v19_v12 = vld [vmem:[%s266_s1 + $0x18] sm:$0xff] }
   0x7   :  { %v18_v13 = vld [vmem:[%s266_s1 + $0x10] sm:$0xff]  ;;  %v17_v14 = vld [vmem:[%s266_s1 + $0x8] sm:$0xff]  ;;  %v16_v15 = vld [vmem:[%s266_s1] sm:$0xff] }
   0x8   :  { %v15_v16 = vld [vmem:[%s265_s0] sm:$0xf] }
   0x9   :  { %v143_v17 = vld [vmem:[%s267_s2] ss:$0 sm:$0xff] }
   0xa   :  { %127 = vmatpush.xpose.msk.msra.mxu0 %vm36_vm0, %v29_v2 }
   0xe   :  { %128 = vmatpush.xpose.msk.msra.mxu0 %vm36_vm0, %v28_v3 }
  0x12   :  { %129 = vmatpush.xpose.msk.msra.mxu0 %vm36_vm0, %v27_v4 }
  0x16   :  { %130 = vmatpush.xpose.msk.msra.mxu0 %vm36_vm0, %v26_v5 }
  0x1a   :  { %131 = vmatpush.xpose.msk.msra.mxu0 %vm36_vm0, %v25_v6 }
  0x1e   :  { %132 = vmatpush.xpose.msk.msra.mxu0 %vm36_vm0, %v24_v7 }
  0x22   :  { %133 = vmatpush.xpose.msk.msra.mxu0 %vm36_vm0, %v23_v8 }
  0x26   :  { %134 = vmatpush.xpose.msk.msra.mxu0 %vm36_vm0, %v22_v9 }
  0x2a   :  { %135 = vmatpush.xpose.msk.msra.mxu0 %vm36_vm0, %v21_v10 }
  0x2e   :  { %136 = vmatpush.xpose.msk.msra.mxu0 %vm36_vm0, %v20_v11 }
  0x32   :  { %137 = vmatpush.xpose.msk.msra.mxu0 %vm36_vm0, %v19_v12 }
  0x36   :  { %138 = vmatpush.xpose.msk.msra.mxu0 %vm36_vm0, %v18_v13 }
  0x3a   :  { %139 = vmatpush.xpose.msk.msra.mxu0 %vm36_vm0, %v17_v14 }
  0x3e   :  { %140 = vmatpush.xpose.msk.msra.mxu0 %vm36_vm0, %v16_v15 }
  0x41   :  { %141 = vmatmul.msk.f32.vlgmr.msra.gmra.mxu0 %vm36_vm0, %v15_v16 }
  0xbe   :  { %v105_v18 = vpop.f32.mrf.mxu0 }
  0xbf   :  { %v106_v19 = vadd.f32 %v143_v17, %v105_v18 }
  0xc1   :  { %108 = vst [vmem:[#allocation2] sm:$0xf] %v106_v19 }
  0xc2   :  { %119 = dma.vmem_to_hbm [thread:$0]  %s115_s22, 64, %s117_s25, [#allocation3]  }
  0xc3   :  { %168 = dma.done.wait [#allocation3], 64  }
  0xc4   :  { %169 = vsyncadd [#allocation3], 4294967232 }
  0xc5   :  { %124 = vsyncpa [#allocation3], 1 }

</bundles_post_ra>
